<compile_context>
chip_gen: v6e
topology: v6e:2x2x1
jax: 0.10.0
libtpu: 0.0.40
codegen_flags: <defaults>
</compile_context>

<pallas_src>
import functools

import jax
import jax.numpy as jnp
from jax.experimental import pallas as pl
from jax.experimental.pallas import tpu as pltpu


def _local_padder_kernel(x_ref, above_ref, below_ref, out_ref, *, npw, B, H, W, pad):
    """One grid step = one (patch-row, channel-tile) output block.

    x_ref     : (npw, B, cb, H, W)        all patches of this patch row
    above_ref : (B, cb, pad, npw*W+2pad)  bottom edge rows of the row above (zeros at border)
    below_ref : (B, cb, pad, npw*W+2pad)  top edge rows of the row below    (zeros at border)
    out_ref   : (npw*B, cb, crop, crop)   npw output patches, batch-contiguous
    """
    crop = W + 2 * pad
    for pw in range(npw):
        o0 = pw * B
        centre = x_ref[pw]                                    # (B, cb, H, W)
        cb = centre.shape[1]

        # interior rows: centre patch plus left/right halo columns
        out_ref[o0:o0 + B, :, pad:pad + H, pad:pad + W] = centre
        if pw == 0:
            out_ref[o0:o0 + B, :, pad:pad + H, 0:pad] = jnp.zeros(
                (B, cb, H, pad), centre.dtype)
        else:
            out_ref[o0:o0 + B, :, pad:pad + H, 0:pad] = \
                x_ref[pw - 1, :, :, :, W - pad:W]
        if pw == npw - 1:
            out_ref[o0:o0 + B, :, pad:pad + H, pad + W:crop] = jnp.zeros(
                (B, cb, H, pad), centre.dtype)
        else:
            out_ref[o0:o0 + B, :, pad:pad + H, pad + W:crop] = \
                x_ref[pw + 1, :, :, :, 0:pad]

        # top / bottom halo rows (full crop width, corners included via the
        # merged-width edge-row slabs)
        out_ref[o0:o0 + B, :, 0:pad, :] = above_ref[:, :, :, pw * W:pw * W + crop]
        out_ref[o0:o0 + B, :, pad + H:crop, :] = below_ref[:, :, :, pw * W:pw * W + crop]


def local_padder(x, num_patches_h=3, num_patches_w=3, padding_size=1,
                 conv_reduction=2, vmem_budget_bytes=8 << 20):
    nph, npw, pad = num_patches_h, num_patches_w, padding_size
    N, C, H, W = x.shape
    assert N % (nph * npw) == 0, "batch must contain nph*npw patch groups"
    B = N // (nph * npw)
    # crop size and stride both use W for the H dimension -> square patches
    # (mirrors the module's implicit assumption).
    assert H == W, "LocalPadder implicitly assumes square patches"
    # Symmetric `pad`-wide halo on every side requires conv_reduction == 2.
    assert conv_reduction == 2 and 1 <= pad <= min(H, W), \
        "kernel implements the conv_reduction=2 halo geometry"
    crop = W + pad * conv_reduction
    mw = npw * W + 2 * pad          # merged-image width incl. zero border

    # (nph, npw, B, C, H, W): patch q = ph*npw + pw occupies x[q*B:(q+1)*B]
    x5 = x.reshape(nph, npw, B, C, H, W)

    # ---- tiny wrapper-side halo gather (edge rows of each patch row) --------
    def merged_rows(rows):          # rows: (nph, npw, B, C, pad, W)
        r = rows.transpose(0, 2, 3, 4, 1, 5).reshape(nph, B, C, pad, npw * W)
        return jnp.pad(r, ((0, 0),) * 4 + ((pad, pad),))   # zero lane border
    rows_bottom = merged_rows(x5[:, :, :, :, H - pad:, :])   # last rows of each patch row
    rows_top = merged_rows(x5[:, :, :, :, :pad, :])          # first rows of each patch row
    zrow = jnp.zeros((1, B, C, pad, mw), x.dtype)
    halo_above = jnp.concatenate([zrow, rows_bottom[:nph - 1]], axis=0)  # (nph,B,C,pad,mw)
    halo_below = jnp.concatenate([rows_top[1:], zrow], axis=0)           # (nph,B,C,pad,mw)

    # ---- channel tile so double-buffered, (8,128)-padded blocks fit VMEM ----
    pad8 = lambda n: -(-n // 8) * 8
    pad128 = lambda n: -(-n // 128) * 128
    itemsize = jnp.dtype(x.dtype).itemsize
    per_chan = (npw * B * pad8(H) * pad128(W)
                + 2 * B * pad8(pad) * pad128(mw)
                + npw * B * pad8(crop) * pad128(crop)) * itemsize
    max_cb = max(1, int(vmem_budget_bytes) // (2 * per_chan))   # x2: double buffering
    cb = max(d for d in range(1, C + 1) if C % d == 0 and d <= max_cb)
    n_cb = C // cb

    kernel = functools.partial(_local_padder_kernel,
                               npw=npw, B=B, H=H, W=W, pad=pad)

    return pl.pallas_call(
        kernel,
        out_shape=jax.ShapeDtypeStruct((N, C, crop, crop), x.dtype),
        grid_spec=pltpu.PrefetchScalarGridSpec(
            num_scalar_prefetch=0,
            grid=(nph, n_cb),
            in_specs=[
                pl.BlockSpec((None, npw, B, cb, H, W),
                             lambda ph, c: (ph, 0, 0, c, 0, 0)),
                pl.BlockSpec((None, B, cb, pad, mw),
                             lambda ph, c: (ph, 0, c, 0, 0)),
                pl.BlockSpec((None, B, cb, pad, mw),
                             lambda ph, c: (ph, 0, c, 0, 0)),
            ],
            out_specs=pl.BlockSpec((npw * B, cb, crop, crop),
                                   lambda ph, c: (ph, c, 0, 0)),
        ),
        compiler_params=pltpu.CompilerParams(
            dimension_semantics=("parallel", "parallel")),
    )(x5, halo_above, halo_below)


def _reference(x, nph, npw, pad, conv_red):
    """Pure-JAX reference mirroring merge_patches_into_image + F.pad + crop_images."""
    N, C, H, W = x.shape
    B = N // (nph * npw)
    merged = (x.reshape(nph, npw, B, C, H, W)
               .transpose(2, 3, 0, 4, 1, 5)
               .reshape(B, C, nph * H, npw * W))
    padded = jnp.pad(merged, ((0, 0), (0, 0), (pad, pad), (pad, pad)))
    crop = W + pad * conv_red
    patches = []
    for h in range(nph):
        for w in range(npw):
            patches.append(padded[:, :, h * W:h * W + crop, w * W:w * W + crop])
    return jnp.concatenate(patches, axis=0)


if __name__ == "__main__":
    key = jax.random.PRNGKey(0)
    B, C, H, W = 2, 4, 16, 16
    nph = npw = 3
    # LocalPadder has no learnable parameters; only the input is needed.
    x = jax.random.normal(key, (B * nph * npw, C, H, W), dtype=jnp.float32)

    lp = jax.jit(local_padder)
    out = jax.block_until_ready(lp(x))

    ref = _reference(x, nph, npw, 1, 2)
    assert out.shape == (B * nph * npw, C, W + 2, W + 2), out.shape
    assert jnp.allclose(out, ref), "Pallas LocalPadder mismatch vs reference"

    print("KERNEL_OK")
</pallas_src>

<mosaic_0001>
module attributes {stable_mosaic.version = 11 : i64} {
  func.func @_local_padder_kernel(%arg0: i32, %arg1: i32, %arg2: memref<1x3x2x4x16x16xf32, #tpu.memory_space<vmem>>, %arg3: memref<1x2x4x1x50xf32, #tpu.memory_space<vmem>>, %arg4: memref<1x2x4x1x50xf32, #tpu.memory_space<vmem>>, %arg5: memref<6x4x18x18xf32, #tpu.memory_space<vmem>>) attributes {dimension_semantics = [#tpu.dimension_semantics<parallel>, #tpu.dimension_semantics<parallel>], iteration_bounds = array<i64: 3, 1>, scalar_prefetch = 0 : i64, scratch_operands = 0 : i64, tpu.core_type = #tpu.core_type<tc>, window_params = [{transform_indices = @transform_0, window_bounds = array<i64: 1, 3, 2, 4, 16, 16>}, {transform_indices = @transform_1, window_bounds = array<i64: 1, 2, 4, 1, 50>}, {transform_indices = @transform_2, window_bounds = array<i64: 1, 2, 4, 1, 50>}, {transform_indices = @transform_3, window_bounds = array<i64: 6, 4, 18, 18>}]} {
    %c0 = arith.constant 0 : index
    %c0_0 = arith.constant 0 : index
    %c0_1 = arith.constant 0 : index
    %c0_2 = arith.constant 0 : index
    %c0_3 = arith.constant 0 : index
    %c0_4 = arith.constant 0 : index
    %0 = vector.load %arg2[%c0, %c0_0, %c0_1, %c0_2, %c0_3, %c0_4] : memref<1x3x2x4x16x16xf32, #tpu.memory_space<vmem>>, vector<1x1x2x4x16x16xf32>
    %1 = vector.shape_cast %0 : vector<1x1x2x4x16x16xf32> to vector<2x4x16x16xf32>
    %c0_5 = arith.constant 0 : index
    %c0_6 = arith.constant 0 : index
    %c1 = arith.constant 1 : index
    %c1_7 = arith.constant 1 : index
    %2 = vector.load %arg5[%c0_5, %c0_6, %c1, %c1_7] : memref<6x4x18x18xf32, #tpu.memory_space<vmem>>, vector<2x4x16x16xf32>
    tpu.vector_store %arg5[%c0_5, %c0_6, %c1, %c1_7], %1 {strides = array<i32>} : memref<6x4x18x18xf32, #tpu.memory_space<vmem>>, vector<2x4x16x16xf32>,
    %cst = arith.constant 0.000000e+00 : f32
    %3 = vector.broadcast %cst : f32 to vector<2x4x16x1xf32>
    %c0_8 = arith.constant 0 : index
    %c0_9 = arith.constant 0 : index
    %c1_10 = arith.constant 1 : index
    %c0_11 = arith.constant 0 : index
    %4 = vector.load %arg5[%c0_8, %c0_9, %c1_10, %c0_11] : memref<6x4x18x18xf32, #tpu.memory_space<vmem>>, vector<2x4x16x1xf32>
    tpu.vector_store %arg5[%c0_8, %c0_9, %c1_10, %c0_11], %3 {strides = array<i32>} : memref<6x4x18x18xf32, #tpu.memory_space<vmem>>, vector<2x4x16x1xf32>,
    %c0_12 = arith.constant 0 : index
    %c1_13 = arith.constant 1 : index
    %c0_14 = arith.constant 0 : index
    %c0_15 = arith.constant 0 : index
    %c0_16 = arith.constant 0 : index
    %c0_17 = arith.constant 0 : index
    %5 = vector.load %arg2[%c0_12, %c1_13, %c0_14, %c0_15, %c0_16, %c0_17] : memref<1x3x2x4x16x16xf32, #tpu.memory_space<vmem>>, vector<1x1x2x4x16x1xf32>
    %6 = vector.shape_cast %5 : vector<1x1x2x4x16x1xf32> to vector<2x4x16x1xf32>
    %c0_18 = arith.constant 0 : index
    %c0_19 = arith.constant 0 : index
    %c1_20 = arith.constant 1 : index
    %c17 = arith.constant 17 : index
    %7 = vector.load %arg5[%c0_18, %c0_19, %c1_20, %c17] : memref<6x4x18x18xf32, #tpu.memory_space<vmem>>, vector<2x4x16x1xf32>
    tpu.vector_store %arg5[%c0_18, %c0_19, %c1_20, %c17], %6 {strides = array<i32>} : memref<6x4x18x18xf32, #tpu.memory_space<vmem>>, vector<2x4x16x1xf32>,
    %c0_21 = arith.constant 0 : index
    %c0_22 = arith.constant 0 : index
    %c0_23 = arith.constant 0 : index
    %c0_24 = arith.constant 0 : index
    %c0_25 = arith.constant 0 : index
    %8 = vector.load %arg3[%c0_21, %c0_22, %c0_23, %c0_24, %c0_25] : memref<1x2x4x1x50xf32, #tpu.memory_space<vmem>>, vector<1x2x4x1x18xf32>
    %9 = vector.shape_cast %8 : vector<1x2x4x1x18xf32> to vector<2x4x1x18xf32>
    %c0_26 = arith.constant 0 : index
    %c0_27 = arith.constant 0 : index
    %c0_28 = arith.constant 0 : index
    %c0_29 = arith.constant 0 : index
    %10 = vector.load %arg5[%c0_26, %c0_27, %c0_28, %c0_29] : memref<6x4x18x18xf32, #tpu.memory_space<vmem>>, vector<2x4x1x18xf32>
    tpu.vector_store %arg5[%c0_26, %c0_27, %c0_28, %c0_29], %9 {strides = array<i32>} : memref<6x4x18x18xf32, #tpu.memory_space<vmem>>, vector<2x4x1x18xf32>,
    %c0_30 = arith.constant 0 : index
    %c0_31 = arith.constant 0 : index
    %c0_32 = arith.constant 0 : index
    %c0_33 = arith.constant 0 : index
    %c0_34 = arith.constant 0 : index
    %11 = vector.load %arg4[%c0_30, %c0_31, %c0_32, %c0_33, %c0_34] : memref<1x2x4x1x50xf32, #tpu.memory_space<vmem>>, vector<1x2x4x1x18xf32>
    %12 = vector.shape_cast %11 : vector<1x2x4x1x18xf32> to vector<2x4x1x18xf32>
    %c0_35 = arith.constant 0 : index
    %c0_36 = arith.constant 0 : index
    %c17_37 = arith.constant 17 : index
    %c0_38 = arith.constant 0 : index
    %13 = vector.load %arg5[%c0_35, %c0_36, %c17_37, %c0_38] : memref<6x4x18x18xf32, #tpu.memory_space<vmem>>, vector<2x4x1x18xf32>
    tpu.vector_store %arg5[%c0_35, %c0_36, %c17_37, %c0_38], %12 {strides = array<i32>} : memref<6x4x18x18xf32, #tpu.memory_space<vmem>>, vector<2x4x1x18xf32>,
    %c0_39 = arith.constant 0 : index
    %c1_40 = arith.constant 1 : index
    %c0_41 = arith.constant 0 : index
    %c0_42 = arith.constant 0 : index
    %c0_43 = arith.constant 0 : index
    %c0_44 = arith.constant 0 : index
    %14 = vector.load %arg2[%c0_39, %c1_40, %c0_41, %c0_42, %c0_43, %c0_44] : memref<1x3x2x4x16x16xf32, #tpu.memory_space<vmem>>, vector<1x1x2x4x16x16xf32>
    %15 = vector.shape_cast %14 : vector<1x1x2x4x16x16xf32> to vector<2x4x16x16xf32>
    %c2 = arith.constant 2 : index
    %c0_45 = arith.constant 0 : index
    %c1_46 = arith.constant 1 : index
    %c1_47 = arith.constant 1 : index
    %16 = vector.load %arg5[%c2, %c0_45, %c1_46, %c1_47] : memref<6x4x18x18xf32, #tpu.memory_space<vmem>>, vector<2x4x16x16xf32>
    tpu.vector_store %arg5[%c2, %c0_45, %c1_46, %c1_47], %15 {strides = array<i32>} : memref<6x4x18x18xf32, #tpu.memory_space<vmem>>, vector<2x4x16x16xf32>,
    %c0_48 = arith.constant 0 : index
    %c0_49 = arith.constant 0 : index
    %c0_50 = arith.constant 0 : index
    %c0_51 = arith.constant 0 : index
    %c0_52 = arith.constant 0 : index
    %c15 = arith.constant 15 : index
    %17 = vector.load %arg2[%c0_48, %c0_49, %c0_50, %c0_51, %c0_52, %c15] : memref<1x3x2x4x16x16xf32, #tpu.memory_space<vmem>>, vector<1x1x2x4x16x1xf32>
    %18 = vector.shape_cast %17 : vector<1x1x2x4x16x1xf32> to vector<2x4x16x1xf32>
    %c2_53 = arith.constant 2 : index
    %c0_54 = arith.constant 0 : index
    %c1_55 = arith.constant 1 : index
    %c0_56 = arith.constant 0 : index
    %19 = vector.load %arg5[%c2_53, %c0_54, %c1_55, %c0_56] : memref<6x4x18x18xf32, #tpu.memory_space<vmem>>, vector<2x4x16x1xf32>
    tpu.vector_store %arg5[%c2_53, %c0_54, %c1_55, %c0_56], %18 {strides = array<i32>} : memref<6x4x18x18xf32, #tpu.memory_space<vmem>>, vector<2x4x16x1xf32>,
    %c0_57 = arith.constant 0 : index
    %c2_58 = arith.constant 2 : index
    %c0_59 = arith.constant 0 : index
    %c0_60 = arith.constant 0 : index
    %c0_61 = arith.constant 0 : index
    %c0_62 = arith.constant 0 : index
    %20 = vector.load %arg2[%c0_57, %c2_58, %c0_59, %c0_60, %c0_61, %c0_62] : memref<1x3x2x4x16x16xf32, #tpu.memory_space<vmem>>, vector<1x1x2x4x16x1xf32>
    %21 = vector.shape_cast %20 : vector<1x1x2x4x16x1xf32> to vector<2x4x16x1xf32>
    %c2_63 = arith.constant 2 : index
    %c0_64 = arith.constant 0 : index
    %c1_65 = arith.constant 1 : index
    %c17_66 = arith.constant 17 : index
    %22 = vector.load %arg5[%c2_63, %c0_64, %c1_65, %c17_66] : memref<6x4x18x18xf32, #tpu.memory_space<vmem>>, vector<2x4x16x1xf32>
    tpu.vector_store %arg5[%c2_63, %c0_64, %c1_65, %c17_66], %21 {strides = array<i32>} : memref<6x4x18x18xf32, #tpu.memory_space<vmem>>, vector<2x4x16x1xf32>,
    %c0_67 = arith.constant 0 : index
    %c0_68 = arith.constant 0 : index
    %c0_69 = arith.constant 0 : index
    %c0_70 = arith.constant 0 : index
    %c16 = arith.constant 16 : index
    %23 = vector.load %arg3[%c0_67, %c0_68, %c0_69, %c0_70, %c16] : memref<1x2x4x1x50xf32, #tpu.memory_space<vmem>>, vector<1x2x4x1x18xf32>
    %24 = vector.shape_cast %23 : vector<1x2x4x1x18xf32> to vector<2x4x1x18xf32>
    %c2_71 = arith.constant 2 : index
    %c0_72 = arith.constant 0 : index
    %c0_73 = arith.constant 0 : index
    %c0_74 = arith.constant 0 : index
    %25 = vector.load %arg5[%c2_71, %c0_72, %c0_73, %c0_74] : memref<6x4x18x18xf32, #tpu.memory_space<vmem>>, vector<2x4x1x18xf32>
    tpu.vector_store %arg5[%c2_71, %c0_72, %c0_73, %c0_74], %24 {strides = array<i32>} : memref<6x4x18x18xf32, #tpu.memory_space<vmem>>, vector<2x4x1x18xf32>,
    %c0_75 = arith.constant 0 : index
    %c0_76 = arith.constant 0 : index
    %c0_77 = arith.constant 0 : index
    %c0_78 = arith.constant 0 : index
    %c16_79 = arith.constant 16 : index
    %26 = vector.load %arg4[%c0_75, %c0_76, %c0_77, %c0_78, %c16_79] : memref<1x2x4x1x50xf32, #tpu.memory_space<vmem>>, vector<1x2x4x1x18xf32>
    %27 = vector.shape_cast %26 : vector<1x2x4x1x18xf32> to vector<2x4x1x18xf32>
    %c2_80 = arith.constant 2 : index
    %c0_81 = arith.constant 0 : index
    %c17_82 = arith.constant 17 : index
    %c0_83 = arith.constant 0 : index
    %28 = vector.load %arg5[%c2_80, %c0_81, %c17_82, %c0_83] : memref<6x4x18x18xf32, #tpu.memory_space<vmem>>, vector<2x4x1x18xf32>
    tpu.vector_store %arg5[%c2_80, %c0_81, %c17_82, %c0_83], %27 {strides = array<i32>} : memref<6x4x18x18xf32, #tpu.memory_space<vmem>>, vector<2x4x1x18xf32>,
    %c0_84 = arith.constant 0 : index
    %c2_85 = arith.constant 2 : index
    %c0_86 = arith.constant 0 : index
    %c0_87 = arith.constant 0 : index
    %c0_88 = arith.constant 0 : index
    %c0_89 = arith.constant 0 : index
    %29 = vector.load %arg2[%c0_84, %c2_85, %c0_86, %c0_87, %c0_88, %c0_89] : memref<1x3x2x4x16x16xf32, #tpu.memory_space<vmem>>, vector<1x1x2x4x16x16xf32>
    %30 = vector.shape_cast %29 : vector<1x1x2x4x16x16xf32> to vector<2x4x16x16xf32>
    %c4 = arith.constant 4 : index
    %c0_90 = arith.constant 0 : index
    %c1_91 = arith.constant 1 : index
    %c1_92 = arith.constant 1 : index
    %31 = vector.load %arg5[%c4, %c0_90, %c1_91, %c1_92] : memref<6x4x18x18xf32, #tpu.memory_space<vmem>>, vector<2x4x16x16xf32>
    tpu.vector_store %arg5[%c4, %c0_90, %c1_91, %c1_92], %30 {strides = array<i32>} : memref<6x4x18x18xf32, #tpu.memory_space<vmem>>, vector<2x4x16x16xf32>,
    %c0_93 = arith.constant 0 : index
    %c1_94 = arith.constant 1 : index
    %c0_95 = arith.constant 0 : index
    %c0_96 = arith.constant 0 : index
    %c0_97 = arith.constant 0 : index
    %c15_98 = arith.constant 15 : index
    %32 = vector.load %arg2[%c0_93, %c1_94, %c0_95, %c0_96, %c0_97, %c15_98] : memref<1x3x2x4x16x16xf32, #tpu.memory_space<vmem>>, vector<1x1x2x4x16x1xf32>
    %33 = vector.shape_cast %32 : vector<1x1x2x4x16x1xf32> to vector<2x4x16x1xf32>
    %c4_99 = arith.constant 4 : index
    %c0_100 = arith.constant 0 : index
    %c1_101 = arith.constant 1 : index
    %c0_102 = arith.constant 0 : index
    %34 = vector.load %arg5[%c4_99, %c0_100, %c1_101, %c0_102] : memref<6x4x18x18xf32, #tpu.memory_space<vmem>>, vector<2x4x16x1xf32>
    tpu.vector_store %arg5[%c4_99, %c0_100, %c1_101, %c0_102], %33 {strides = array<i32>} : memref<6x4x18x18xf32, #tpu.memory_space<vmem>>, vector<2x4x16x1xf32>,
    %cst_103 = arith.constant 0.000000e+00 : f32
    %35 = vector.broadcast %cst_103 : f32 to vector<2x4x16x1xf32>
    %c4_104 = arith.constant 4 : index
    %c0_105 = arith.constant 0 : index
    %c1_106 = arith.constant 1 : index
    %c17_107 = arith.constant 17 : index
    %36 = vector.load %arg5[%c4_104, %c0_105, %c1_106, %c17_107] : memref<6x4x18x18xf32, #tpu.memory_space<vmem>>, vector<2x4x16x1xf32>
    tpu.vector_store %arg5[%c4_104, %c0_105, %c1_106, %c17_107], %35 {strides = array<i32>} : memref<6x4x18x18xf32, #tpu.memory_space<vmem>>, vector<2x4x16x1xf32>,
    %c0_108 = arith.constant 0 : index
    %c0_109 = arith.constant 0 : index
    %c0_110 = arith.constant 0 : index
    %c0_111 = arith.constant 0 : index
    %c32 = arith.constant 32 : index
    %37 = vector.load %arg3[%c0_108, %c0_109, %c0_110, %c0_111, %c32] : memref<1x2x4x1x50xf32, #tpu.memory_space<vmem>>, vector<1x2x4x1x18xf32>
    %38 = vector.shape_cast %37 : vector<1x2x4x1x18xf32> to vector<2x4x1x18xf32>
    %c4_112 = arith.constant 4 : index
    %c0_113 = arith.constant 0 : index
    %c0_114 = arith.constant 0 : index
    %c0_115 = arith.constant 0 : index
    %39 = vector.load %arg5[%c4_112, %c0_113, %c0_114, %c0_115] : memref<6x4x18x18xf32, #tpu.memory_space<vmem>>, vector<2x4x1x18xf32>
    tpu.vector_store %arg5[%c4_112, %c0_113, %c0_114, %c0_115], %38 {strides = array<i32>} : memref<6x4x18x18xf32, #tpu.memory_space<vmem>>, vector<2x4x1x18xf32>,
    %c0_116 = arith.constant 0 : index
    %c0_117 = arith.constant 0 : index
    %c0_118 = arith.constant 0 : index
    %c0_119 = arith.constant 0 : index
    %c32_120 = arith.constant 32 : index
    %40 = vector.load %arg4[%c0_116, %c0_117, %c0_118, %c0_119, %c32_120] : memref<1x2x4x1x50xf32, #tpu.memory_space<vmem>>, vector<1x2x4x1x18xf32>
    %41 = vector.shape_cast %40 : vector<1x2x4x1x18xf32> to vector<2x4x1x18xf32>
    %c4_121 = arith.constant 4 : index
    %c0_122 = arith.constant 0 : index
    %c17_123 = arith.constant 17 : index
    %c0_124 = arith.constant 0 : index
    %42 = vector.load %arg5[%c4_121, %c0_122, %c17_123, %c0_124] : memref<6x4x18x18xf32, #tpu.memory_space<vmem>>, vector<2x4x1x18xf32>
    tpu.vector_store %arg5[%c4_121, %c0_122, %c17_123, %c0_124], %41 {strides = array<i32>} : memref<6x4x18x18xf32, #tpu.memory_space<vmem>>, vector<2x4x1x18xf32>,
    return
  }
  func.func @transform_0(%arg0: i32, %arg1: i32) -> (i32, i32, i32, i32, i32, i32) {
    %c0_i32 = arith.constant 0 : i32
    %c0_i32_0 = arith.constant 0 : i32
    %c0_i32_1 = arith.constant 0 : i32
    %c0_i32_2 = arith.constant 0 : i32
    %c0_i32_3 = arith.constant 0 : i32
    return %arg0, %c0_i32, %c0_i32_0, %arg1, %c0_i32_1, %c0_i32_2 : i32, i32, i32, i32, i32, i32
  }
  func.func @transform_1(%arg0: i32, %arg1: i32) -> (i32, i32, i32, i32, i32) {
    %c0_i32 = arith.constant 0 : i32
    %c0_i32_0 = arith.constant 0 : i32
    %c0_i32_1 = arith.constant 0 : i32
    %c0_i32_2 = arith.constant 0 : i32
    return %arg0, %c0_i32, %arg1, %c0_i32_0, %c0_i32_1 : i32, i32, i32, i32, i32
  }
  func.func @transform_2(%arg0: i32, %arg1: i32) -> (i32, i32, i32, i32, i32) {
    %c0_i32 = arith.constant 0 : i32
    %c0_i32_0 = arith.constant 0 : i32
    %c0_i32_1 = arith.constant 0 : i32
    %c0_i32_2 = arith.constant 0 : i32
    return %arg0, %c0_i32, %arg1, %c0_i32_0, %c0_i32_1 : i32, i32, i32, i32, i32
  }
  func.func @transform_3(%arg0: i32, %arg1: i32) -> (i32, i32, i32, i32) {
    %c0_i32 = arith.constant 0 : i32
    %c0_i32_0 = arith.constant 0 : i32
    %c0_i32_1 = arith.constant 0 : i32
    return %arg0, %arg1, %c0_i32, %c0_i32_0 : i32, i32, i32, i32
  }
}

</mosaic_0001>

<bundles_post_ra>
// kernel: local_padder.1
= control target key start
LH: loop header
LB: loop body
LE: loop exit
PB: predicated region body
PF: predicated region fallthrough
CT: control target
= control target key end

     0   :  { %s1810_s12 = smov 0   ;;  %s1812_s13 = smov 0   ;;  %s2782_s0 = inlined_call_operand.vmem [shape: f32[3,3,2,4,16,16], index: 0, kind: input, shape index: {}]   ;;  %s2783_s1 = inlined_call_operand.vmem [shape: f32[3,2,4,1,50], index: 1, kind: input, shape index: {}]   ;;  %s2784_s2 = inlined_call_operand.vmem [shape: f32[3,2,4,1,50], index: 2, kind: input, shape index: {}]   ;;  %s2785_s3 = inlined_call_operand.vmem [shape: f32[18,4,18,18], index: 3, kind: output, shape index: {}]  }
   0x1   :  { %s1814_s14 = smov 0  }
   0x2 LB: > { %s25_s15 = sadd.s32 1, %s1778_s13  ;;  %p1481_p0 = scmp.ge.s32.totalorder %s1782_s14, 1  ;;  %s1782_s14 = sphi %s1814_s14, %s13_s14   ;;  %s1778_s13 = sphi %s1812_s13, %s2787_s13   ;;  %s1774_s12 = sphi %s1810_s12, %s2786_s12  }
   0x3   : > { %p27_p1 = scmp.ge.s32.totalorder %s25_s15, 3  ;;  %p191_p2 = scmp.lt.s32.totalorder %s1782_s14, 4 }
   0x5   : > { %s2789_s15 = smov (%p27_p1, %s25_s15), 0  ;;  %p192_p3 = pnand %p1481_p0, %p191_p2 }
   0x6   : > { %p243_p4 = scmp.lt.s32.totalorder (!%p192_p3), %s1774_s12, 2  ;;  %s1784_s21 = smov (!%p192_p3), 1  }
   0x7   : > { %195 = sbr.rel (%p192_p3) target bundleno = 418 (0x1a2), region = 32  ;;  %s1785_s28 = smov (!%p192_p3), 17  }
   0x8   : > { %s271_s22 = smul.u32 (!%p192_p3), 6, %s1774_s12  ;;  %s1786_s8 = smov (!%p192_p3), 113  }
   0x9   : > { %s1788_s9 = smov (!%p192_p3), 112   ;;  %s1789_s10 = smov (!%p192_p3), 96  }
   0xa   : > { %p273_p5 = scmp.lt.s32.totalorder (!%p192_p3), %s271_s22, 17 }
   0xc   : > { %s1832_s16 = scalar_select %p243_p4, %s1774_s12, 2  ;;  %vm504_vm0 = vcmask 139264   ;;  %vm364_vm1 = vcmask 138248   ;;  %vm381_vm2 = vcmask 7168   ;;  %v1787_v50 = vmov 0.0  }
   0xd   : > { %s2791_s22 = smov (!%p273_p5, %s271_s22), 17  ;;  %vm479_vm3 = vcmask 146568  }
   0xe   : > { %s1728_s17 = smul.u32 384, %s1832_s16  ;;  %s1483_s24 = sshll.u32 %s1832_s16, 3 }
   0xf   : > { %s1729_s23 = smul.u32 96, %s2791_s22  ;;  %s1933_s27 = scalar_lea.vmem %s2783_s1, %s1483_s24 }
  0x10   : > { %s1838_s20 = scalar_lea.vmem %s2782_s0, %s1728_s17  ;;  %v496_v20 = vld [vmem:[%s1933_s27] sm:$0x1]  ;;  %v497_v21 = vld [vmem:[%s1933_s27 + $0x1] sm:$0x1]  ;;  %v498_v22 = vld [vmem:[%s1933_s27 + $0x2] sm:$0x1]  ;;  %s2009_s7 = scalar_lea.vmem %s2784_s2, %s1483_s24 }
  0x11   : > { %v1841_v0 = vld [vmem:[%s1838_s20 + $0x10] sm:$0xff]  ;;  %v1844_v1 = vld [vmem:[%s1838_s20] sm:$0xff]  ;;  %v1851_v2 = vld [vmem:[%s1838_s20 + $0x18] sm:$0xff]  ;;  %s1951_s4 = scalar_lea.vmem %s2785_s3, %s1729_s23 }
  0x12   : > { %320 = vrot.lane.b32.xlu1 %v1841_v0, %s1784_s21  ;;  %316 = vrot.lane.b32.xlu0 %v1844_v1, %s1784_s21  ;;  %v1854_v3 = vld [vmem:[%s1838_s20 + $0x8] sm:$0xff]  ;;  %v1864_v5 = vld [vmem:[%s1838_s20 + $0x20] sm:$0xff] }
  0x13   : > { %v1861_v4 = vld [vmem:[%s1838_s20 + $0x28] sm:$0xff]  ;;  %v1871_v6 = vld [vmem:[%s1838_s20 + $0x38] sm:$0xff]  ;;  %v1874_v7 = vld [vmem:[%s1838_s20 + $0x30] sm:$0xff]  ;;  %505 = vst.msk [vmem:[%s1951_s4] sm:$0x1] %vm504_vm0, %v496_v20 }
  0x14   : > { %v1881_v8 = vld [vmem:[%s1838_s20 + $0x48] sm:$0xff]  ;;  %v1884_v9 = vld [vmem:[%s1838_s20 + $0x40] sm:$0xff]  ;;  %v1892_v10 = vld [vmem:[%s1838_s20 + $0x58] sm:$0xff]  ;;  %506 = vst.msk [vmem:[%s1951_s4 + $0x18] sm:$0x1] %vm504_vm0, %v497_v21 }
  0x15   : > { %v1895_v11 = vld [vmem:[%s1838_s20 + $0x50] sm:$0xff]  ;;  %v1902_v12 = vld [vmem:[%s1838_s20 + $0x68] sm:$0xff]  ;;  %v1905_v13 = vld [vmem:[%s1838_s20 + $0x60] sm:$0xff]  ;;  %507 = vst.msk [vmem:[%s1951_s4 + $0x30] sm:$0x1] %vm504_vm0, %v498_v22 }
  0x16   : > { %322 = vrot.lane.b32.xlu1 %v1851_v2, %s1784_s21  ;;  %318 = vrot.lane.b32.xlu0 %v1854_v3, %s1784_s21  ;;  %v1912_v14 = vld [vmem:[%s1838_s20 + $0x78] sm:$0xff]  ;;  %v1915_v15 = vld [vmem:[%s1838_s20 + $0x70] sm:$0xff] }
  0x17   : > { %v1922_v16 = vld [vmem:[%s1838_s20 + $0x88] sm:$0xff]  ;;  %v1925_v17 = vld [vmem:[%s1838_s20 + $0x80] sm:$0xff]  ;;  %v1936_v18 = vld [vmem:[%s1838_s20 + $0x98] sm:$0xff] }
  0x18   : > { %v1939_v19 = vld [vmem:[%s1838_s20 + $0x90] sm:$0xff]  ;;  %v499_v23 = vld [vmem:[%s1933_s27 + $0x3] sm:$0x1]  ;;  %v500_v24 = vld [vmem:[%s1933_s27 + $0x4] sm:$0x1] }
  0x19   : > { %v501_v25 = vld [vmem:[%s1933_s27 + $0x5] sm:$0x1]  ;;  %v502_v26 = vld [vmem:[%s1933_s27 + $0x6] sm:$0x1]  ;;  %v503_v27 = vld [vmem:[%s1933_s27 + $0x7] sm:$0x1] }
  0x1a   : > { %326 = vrot.lane.b32.xlu1 %v1861_v4, %s1784_s21  ;;  %324 = vrot.lane.b32.xlu0 %v1864_v5, %s1784_s21  ;;  %508 = vst.msk [vmem:[%s1951_s4 + $0x48] sm:$0x1] %vm504_vm0, %v499_v23  ;;  %509 = vst.msk [vmem:[%s1951_s4 + $0x60] sm:$0x1] %vm504_vm0, %v500_v24 }
  0x1b   : > { %510 = vst.msk [vmem:[%s1951_s4 + $0x78] sm:$0x1] %vm504_vm0, %v501_v25  ;;  %511 = vst.msk [vmem:[%s1951_s4 + $0x90] sm:$0x1] %vm504_vm0, %v502_v26  ;;  %v1979_v28 = vld [vmem:[%s1838_s20 + $0xa8] sm:$0xff]  ;;  %v1982_v29 = vld [vmem:[%s1838_s20 + $0xa0] sm:$0xff] }
  0x1c   : > { %512 = vst.msk [vmem:[%s1951_s4 + $0xa8] sm:$0x1] %vm504_vm0, %v503_v27  ;;  %v1989_v30 = vld [vmem:[%s1838_s20 + $0xb8] sm:$0xff]  ;;  %v1992_v31 = vld [vmem:[%s1838_s20 + $0xb0] sm:$0xff]  ;;  %v1999_v32 = vld [vmem:[%s1838_s20 + $0xc8] sm:$0xff] }
  0x1d   : > { %v2002_v33 = vld [vmem:[%s1838_s20 + $0xc0] sm:$0xff]  ;;  %v2012_v34 = vld [vmem:[%s1838_s20 + $0xd8] sm:$0xff]  ;;  %v2015_v35 = vld [vmem:[%s1838_s20 + $0xd0] sm:$0xff] }
  0x1e   : > { %330 = vrot.lane.b32.xlu1 %v1871_v6, %s1784_s21  ;;  %328 = vrot.lane.b32.xlu0 %v1874_v7, %s1784_s21  ;;  %v513_v36 = vld [vmem:[%s2009_s7] sm:$0x1]  ;;  %v514_v37 = vld [vmem:[%s2009_s7 + $0x1] sm:$0x1] }
  0x1f   : > { %v515_v38 = vld [vmem:[%s2009_s7 + $0x2] sm:$0x1]  ;;  %v516_v39 = vld [vmem:[%s2009_s7 + $0x3] sm:$0x1]  ;;  %v517_v40 = vld [vmem:[%s2009_s7 + $0x4] sm:$0x1] }
  0x20   : > { %521 = vst.msk [vmem:[%s1951_s4 + $0x11] sm:$0x1] %vm504_vm0, %v513_v36  ;;  %522 = vst.msk [vmem:[%s1951_s4 + $0x29] sm:$0x1] %vm504_vm0, %v514_v37  ;;  %v518_v41 = vld [vmem:[%s2009_s7 + $0x5] sm:$0x1] }
  0x21   : > { %523 = vst.msk [vmem:[%s1951_s4 + $0x41] sm:$0x1] %vm504_vm0, %v515_v38  ;;  %v519_v42 = vld [vmem:[%s2009_s7 + $0x6] sm:$0x1]  ;;  %v520_v43 = vld [vmem:[%s2009_s7 + $0x7] sm:$0x1] }
  0x22   : > { %334 = vrot.lane.b32.xlu1 %v1881_v8, %s1784_s21  ;;  %332 = vrot.lane.b32.xlu0 %v1884_v9, %s1784_s21  ;;  %524 = vst.msk [vmem:[%s1951_s4 + $0x59] sm:$0x1] %vm504_vm0, %v516_v39  ;;  %525 = vst.msk [vmem:[%s1951_s4 + $0x71] sm:$0x1] %vm504_vm0, %v517_v40 }
  0x23   : > { %526 = vst.msk [vmem:[%s1951_s4 + $0x89] sm:$0x1] %vm504_vm0, %v518_v41  ;;  %527 = vst.msk [vmem:[%s1951_s4 + $0xa1] sm:$0x1] %vm504_vm0, %v519_v42  ;;  %v2050_v44 = vld [vmem:[%s1838_s20 + $0xe8] sm:$0xff]  ;;  %v2053_v45 = vld [vmem:[%s1838_s20 + $0xe0] sm:$0xff] }
  0x24   : > { %528 = vst.msk [vmem:[%s1951_s4 + $0xb9] sm:$0x1] %vm504_vm0, %v520_v43  ;;  %v2060_v46 = vld [vmem:[%s1838_s20 + $0xf8] sm:$0xff]  ;;  %v2063_v47 = vld [vmem:[%s1838_s20 + $0xf0] sm:$0xff]  ;;  %v2164_v55 = vld [vmem:[%s1838_s20 + $0x108] sm:$0xff] }
  0x25   : > { %v2167_v56 = vld [vmem:[%s1838_s20 + $0x100] sm:$0xff]  ;;  %v2184_v59 = vld [vmem:[%s1838_s20 + $0x118] sm:$0xff]  ;;  %v2187_v60 = vld [vmem:[%s1838_s20 + $0x110] sm:$0xff] }
  0x26   : > { %338 = vrot.lane.b32.xlu1 %v1892_v10, %s1784_s21  ;;  %336 = vrot.lane.b32.xlu0 %v1895_v11, %s1784_s21  ;;  %v2204_v63 = vld [vmem:[%s1838_s20 + $0x128] sm:$0xff]  ;;  %v2281_v20 = vld [vmem:[%s1838_s20 + $0x160] sm:$0xff] }
  0x27   : > { %v2292_v23 = vld [vmem:[%s1838_s20 + $0x178] sm:$0xff]  ;;  %v2295_v24 = vld [vmem:[%s1838_s20 + $0x170] sm:$0xff]  ;;  %v2306_v27 = vld [vmem:[%s1933_s27 + $0x1] ss:$0 sm:$0xff] }
  0x28   : > { %v2309_v36 = vld [vmem:[%s1933_s27] ss:$0 sm:$0xff]  ;;  %v2320_v39 = vld [vmem:[%s1933_s27 + $0x3] ss:$0 sm:$0xff]  ;;  %v2323_v40 = vld [vmem:[%s1933_s27 + $0x2] ss:$0 sm:$0xff] }
  0x29   : > { %v2334_v43 = vld [vmem:[%s1933_s27 + $0x5] ss:$0 sm:$0xff] }
  0x2a   : > { %342 = vrot.lane.b32.xlu1 %v1902_v12, %s1784_s21  ;;  %340 = vrot.lane.b32.xlu0 %v1905_v13, %s1784_s21 }
  0x2e   : > { %346 = vrot.lane.b32.xlu1 %v1912_v14, %s1784_s21  ;;  %344 = vrot.lane.b32.xlu0 %v1915_v15, %s1784_s21 }
  0x32   : > { %433 = vrot.lane.b32.xlu1 %v1922_v16, %s1785_s28  ;;  %431 = vrot.lane.b32.xlu0 %v1925_v17, %s1785_s28 }
  0x36   : > { %437 = vrot.lane.b32.xlu1 %v1936_v18, %s1785_s28  ;;  %435 = vrot.lane.b32.xlu0 %v1939_v19, %s1785_s28 }
  0x3a   : > { %441 = vrot.lane.b32.xlu1 %v1979_v28, %s1785_s28  ;;  %439 = vrot.lane.b32.xlu0 %v1982_v29, %s1785_s28 }
  0x3e   : > { %445 = vrot.lane.b32.xlu1 %v1989_v30, %s1785_s28  ;;  %443 = vrot.lane.b32.xlu0 %v1992_v31, %s1785_s28 }
  0x42   : > { %449 = vrot.lane.b32.xlu1 %v1999_v32, %s1785_s28  ;;  %447 = vrot.lane.b32.xlu0 %v2002_v33, %s1785_s28 }
  0x46   : > { %453 = vrot.lane.b32.xlu1 %v2012_v34, %s1785_s28  ;;  %451 = vrot.lane.b32.xlu0 %v2015_v35, %s1785_s28 }
  0x4a   : > { %457 = vrot.lane.b32.xlu1 %v2050_v44, %s1785_s28  ;;  %455 = vrot.lane.b32.xlu0 %v2053_v45, %s1785_s28 }
  0x4e   : > { %461 = vrot.lane.b32.xlu1 %v2060_v46, %s1785_s28  ;;  %459 = vrot.lane.b32.xlu0 %v2063_v47, %s1785_s28 }
  0x52   : > { %563 = vrot.lane.b32.xlu1 %v1922_v16, %s1784_s21  ;;  %561 = vrot.lane.b32.xlu0 %v1925_v17, %s1784_s21 }
  0x56   : > { %567 = vrot.lane.b32.xlu1 %v1936_v18, %s1784_s21  ;;  %565 = vrot.lane.b32.xlu0 %v1939_v19, %s1784_s21 }
  0x5a   : > { %571 = vrot.lane.b32.xlu1 %v1979_v28, %s1784_s21  ;;  %569 = vrot.lane.b32.xlu0 %v1982_v29, %s1784_s21 }
  0x5e   : > { %575 = vrot.lane.b32.xlu1 %v1989_v30, %s1784_s21  ;;  %573 = vrot.lane.b32.xlu0 %v1992_v31, %s1784_s21 }
  0x62   : > { %579 = vrot.lane.b32.xlu1 %v1999_v32, %s1784_s21  ;;  %577 = vrot.lane.b32.xlu0 %v2002_v33, %s1784_s21 }
  0x66   : > { %583 = vrot.lane.b32.xlu1 %v2012_v34, %s1784_s21  ;;  %581 = vrot.lane.b32.xlu0 %v2015_v35, %s1784_s21 }
  0x6a   : > { %587 = vrot.lane.b32.xlu1 %v2050_v44, %s1784_s21  ;;  %585 = vrot.lane.b32.xlu0 %v2053_v45, %s1784_s21 }
  0x6e   : > { %591 = vrot.lane.b32.xlu1 %v2060_v46, %s1784_s21  ;;  %589 = vrot.lane.b32.xlu0 %v2063_v47, %s1784_s21 }
  0x72   : > { %660 = vrot.lane.b32.xlu1 %v1854_v3, %s1786_s8  ;;  %658 = vrot.lane.b32.xlu0 %v1844_v1, %s1786_s8  ;;  %v2224_v3 = vld [vmem:[%s1838_s20 + $0x138] sm:$0xff] }
  0x76   : > { %664 = vrot.lane.b32.xlu1 %v1851_v2, %s1786_s8  ;;  %662 = vrot.lane.b32.xlu0 %v1841_v0, %s1786_s8  ;;  %v2207_v0 = vld [vmem:[%s1838_s20 + $0x120] sm:$0xff] }
  0x7a   : > { %668 = vrot.lane.b32.xlu1 %v1861_v4, %s1786_s8  ;;  %666 = vrot.lane.b32.xlu0 %v1864_v5, %s1786_s8  ;;  %v2227_v4 = vld [vmem:[%s1838_s20 + $0x130] sm:$0xff] }
  0x7e   : > { %672 = vrot.lane.b32.xlu1 %v1871_v6, %s1786_s8  ;;  %670 = vrot.lane.b32.xlu0 %v1874_v7, %s1786_s8  ;;  %v2244_v7 = vld [vmem:[%s1838_s20 + $0x148] sm:$0xff] }
  0x82   : > { %676 = vrot.lane.b32.xlu1 %v1881_v8, %s1786_s8  ;;  %674 = vrot.lane.b32.xlu0 %v1884_v9, %s1786_s8  ;;  %v2247_v8 = vld [vmem:[%s1838_s20 + $0x140] sm:$0xff] }
  0x84   : > { %v321_v48 = vpop.permute.xlu1 %320  ;;  %v317_v49 = vpop.permute.xlu0 %316 }
  0x85   : > { %367 = vst.msk [vmem:[%s1951_s4 + $0x19] sm:$0xff] %vm364_vm1, %v321_v48  ;;  %365 = vst.msk [vmem:[%s1951_s4 + $0x1] sm:$0xff] %vm364_vm1, %v317_v49  ;;  %v2337_v48 = vld [vmem:[%s1933_s27 + $0x4] ss:$0 sm:$0xff] }
  0x86   : > { %384 = vst.msk [vmem:[%s1951_s4 + $0x19] sm:$0xff] %vm381_vm2, %v1787_v50  ;;  %382 = vst.msk [vmem:[%s1951_s4 + $0x1] sm:$0xff] %vm381_vm2, %v1787_v50  ;;  %680 = vrot.lane.b32.xlu1 %v1892_v10, %s1786_s8  ;;  %678 = vrot.lane.b32.xlu0 %v1895_v11, %s1786_s8 }
  0x87   : > { %v2264_v11 = vld [vmem:[%s1838_s20 + $0x158] sm:$0xff] }
  0x88   : > { %v323_v51 = vpop.permute.xlu1 %322  ;;  %v319_v52 = vpop.permute.xlu0 %318 }
  0x89   : > { %368 = vst.msk [vmem:[%s1951_s4 + $0x21] sm:$0xff] %vm364_vm1, %v323_v51  ;;  %366 = vst.msk [vmem:[%s1951_s4 + $0x9] sm:$0xff] %vm364_vm1, %v319_v52  ;;  %v2348_v52 = vld [vmem:[%s1933_s27 + $0x7] ss:$0 sm:$0xff] }
  0x8a   : > { %385 = vst.msk [vmem:[%s1951_s4 + $0x21] sm:$0xff] %vm381_vm2, %v1787_v50  ;;  %383 = vst.msk [vmem:[%s1951_s4 + $0x9] sm:$0xff] %vm381_vm2, %v1787_v50  ;;  %684 = vrot.lane.b32.xlu1 %v1902_v12, %s1786_s8  ;;  %682 = vrot.lane.b32.xlu0 %v1905_v13, %s1786_s8 }
  0x8b   : > { %v2267_v12 = vld [vmem:[%s1838_s20 + $0x150] sm:$0xff] }
  0x8c   : > { %v327_v53 = vpop.permute.xlu1 %326  ;;  %v325_v54 = vpop.permute.xlu0 %324 }
  0x8d   : > { %370 = vst.msk [vmem:[%s1951_s4 + $0x39] sm:$0xff] %vm364_vm1, %v327_v53  ;;  %369 = vst.msk [vmem:[%s1951_s4 + $0x31] sm:$0xff] %vm364_vm1, %v325_v54  ;;  %v2351_v53 = vld [vmem:[%s1933_s27 + $0x6] ss:$0 sm:$0xff] }
  0x8e   : > { %387 = vst.msk [vmem:[%s1951_s4 + $0x39] sm:$0xff] %vm381_vm2, %v1787_v50  ;;  %386 = vst.msk [vmem:[%s1951_s4 + $0x31] sm:$0xff] %vm381_vm2, %v1787_v50  ;;  %688 = vrot.lane.b32.xlu1 %v1912_v14, %s1786_s8  ;;  %686 = vrot.lane.b32.xlu0 %v1915_v15, %s1786_s8 }
  0x8f   : > { %v2278_v15 = vld [vmem:[%s1838_s20 + $0x168] sm:$0xff] }
  0x90   : > { %v331_v57 = vpop.permute.xlu1 %330  ;;  %v329_v58 = vpop.permute.xlu0 %328 }
  0x91   : > { %372 = vst.msk [vmem:[%s1951_s4 + $0x51] sm:$0xff] %vm364_vm1, %v331_v57  ;;  %371 = vst.msk [vmem:[%s1951_s4 + $0x49] sm:$0xff] %vm364_vm1, %v329_v58  ;;  %v2362_v58 = vld [vmem:[%s2009_s7 + $0x1] ss:$0 sm:$0xff] }
  0x92   : > { %389 = vst.msk [vmem:[%s1951_s4 + $0x51] sm:$0xff] %vm381_vm2, %v1787_v50  ;;  %388 = vst.msk [vmem:[%s1951_s4 + $0x49] sm:$0xff] %vm381_vm2, %v1787_v50  ;;  %757 = vrot.lane.b32.xlu1 %v2164_v55, %s1785_s28  ;;  %755 = vrot.lane.b32.xlu0 %v2167_v56, %s1785_s28 }
  0x94   : > { %v335_v61 = vpop.permute.xlu1 %334  ;;  %v333_v62 = vpop.permute.xlu0 %332 }
  0x95   : > { %374 = vst.msk [vmem:[%s1951_s4 + $0x69] sm:$0xff] %vm364_vm1, %v335_v61  ;;  %373 = vst.msk [vmem:[%s1951_s4 + $0x61] sm:$0xff] %vm364_vm1, %v333_v62  ;;  %v2365_v61 = vld [vmem:[%s2009_s7] ss:$0 sm:$0xff] }
  0x96   : > { %391 = vst.msk [vmem:[%s1951_s4 + $0x69] sm:$0xff] %vm381_vm2, %v1787_v50  ;;  %390 = vst.msk [vmem:[%s1951_s4 + $0x61] sm:$0xff] %vm381_vm2, %v1787_v50  ;;  %761 = vrot.lane.b32.xlu1 %v2184_v59, %s1785_s28  ;;  %759 = vrot.lane.b32.xlu0 %v2187_v60, %s1785_s28 }
  0x98   : > { %v339_v1 = vpop.permute.xlu1 %338  ;;  %v337_v2 = vpop.permute.xlu0 %336 }
  0x99   : > { %376 = vst.msk [vmem:[%s1951_s4 + $0x81] sm:$0xff] %vm364_vm1, %v339_v1  ;;  %375 = vst.msk [vmem:[%s1951_s4 + $0x79] sm:$0xff] %vm364_vm1, %v337_v2  ;;  %v2376_v2 = vld [vmem:[%s2009_s7 + $0x3] ss:$0 sm:$0xff] }
  0x9a   : > { %393 = vst.msk [vmem:[%s1951_s4 + $0x81] sm:$0xff] %vm381_vm2, %v1787_v50  ;;  %392 = vst.msk [vmem:[%s1951_s4 + $0x79] sm:$0xff] %vm381_vm2, %v1787_v50  ;;  %765 = vrot.lane.b32.xlu1 %v2204_v63, %s1785_s28  ;;  %763 = vrot.lane.b32.xlu0 %v2207_v0, %s1785_s28 }
  0x9c   : > { %v343_v5 = vpop.permute.xlu1 %342  ;;  %v341_v6 = vpop.permute.xlu0 %340 }
  0x9d   : > { %378 = vst.msk [vmem:[%s1951_s4 + $0x99] sm:$0xff] %vm364_vm1, %v343_v5  ;;  %377 = vst.msk [vmem:[%s1951_s4 + $0x91] sm:$0xff] %vm364_vm1, %v341_v6  ;;  %v2379_v5 = vld [vmem:[%s2009_s7 + $0x2] ss:$0 sm:$0xff] }
  0x9e   : > { %395 = vst.msk [vmem:[%s1951_s4 + $0x99] sm:$0xff] %vm381_vm2, %v1787_v50  ;;  %394 = vst.msk [vmem:[%s1951_s4 + $0x91] sm:$0xff] %vm381_vm2, %v1787_v50  ;;  %769 = vrot.lane.b32.xlu1 %v2224_v3, %s1785_s28  ;;  %767 = vrot.lane.b32.xlu0 %v2227_v4, %s1785_s28 }
  0xa0   : > { %v347_v9 = vpop.permute.xlu1 %346  ;;  %v345_v10 = vpop.permute.xlu0 %344 }
  0xa1   : > { %380 = vst.msk [vmem:[%s1951_s4 + $0xb1] sm:$0xff] %vm364_vm1, %v347_v9  ;;  %379 = vst.msk [vmem:[%s1951_s4 + $0xa9] sm:$0xff] %vm364_vm1, %v345_v10  ;;  %v2390_v10 = vld [vmem:[%s2009_s7 + $0x5] ss:$0 sm:$0xff] }
  0xa2   : > { %397 = vst.msk [vmem:[%s1951_s4 + $0xb1] sm:$0xff] %vm381_vm2, %v1787_v50  ;;  %396 = vst.msk [vmem:[%s1951_s4 + $0xa9] sm:$0xff] %vm381_vm2, %v1787_v50  ;;  %773 = vrot.lane.b32.xlu1 %v2244_v7, %s1785_s28  ;;  %771 = vrot.lane.b32.xlu0 %v2247_v8, %s1785_s28 }
  0xa4   : > { %v434_v13 = vpop.permute.xlu1 %433  ;;  %v432_v14 = vpop.permute.xlu0 %431 }
  0xa5   : > { %481 = vst.msk [vmem:[%s1951_s4 + $0x9] sm:$0xff] %vm479_vm3, %v434_v13  ;;  %480 = vst.msk [vmem:[%s1951_s4 + $0x1] sm:$0xff] %vm479_vm3, %v432_v14  ;;  %v2393_v13 = vld [vmem:[%s2009_s7 + $0x4] ss:$0 sm:$0xff] }
  0xa6   : > { %777 = vrot.lane.b32.xlu1 %v2264_v11, %s1785_s28  ;;  %775 = vrot.lane.b32.xlu0 %v2267_v12, %s1785_s28 }
  0xa8   : > { %v438_v21 = vpop.permute.xlu1 %437  ;;  %v436_v22 = vpop.permute.xlu0 %435 }
  0xa9   : > { %483 = vst.msk [vmem:[%s1951_s4 + $0x21] sm:$0xff] %vm479_vm3, %v438_v21  ;;  %482 = vst.msk [vmem:[%s1951_s4 + $0x19] sm:$0xff] %vm479_vm3, %v436_v22  ;;  %v2404_v22 = vld [vmem:[%s2009_s7 + $0x7] ss:$0 sm:$0xff] }
  0xaa   : > { %781 = vrot.lane.b32.xlu1 %v2278_v15, %s1785_s28  ;;  %779 = vrot.lane.b32.xlu0 %v2281_v20, %s1785_s28 }
  0xac   : > { %v442_v25 = vpop.permute.xlu1 %441  ;;  %v440_v26 = vpop.permute.xlu0 %439 }
  0xad   : > { %485 = vst.msk [vmem:[%s1951_s4 + $0x39] sm:$0xff] %vm479_vm3, %v442_v25  ;;  %484 = vst.msk [vmem:[%s1951_s4 + $0x31] sm:$0xff] %vm479_vm3, %v440_v26  ;;  %v2407_v25 = vld [vmem:[%s2009_s7 + $0x6] ss:$0 sm:$0xff] }
  0xae   : > { %785 = vrot.lane.b32.xlu1 %v2292_v23, %s1785_s28  ;;  %783 = vrot.lane.b32.xlu0 %v2295_v24, %s1785_s28 }
  0xb0   : > { %v446_v37 = vpop.permute.xlu1 %445  ;;  %v444_v38 = vpop.permute.xlu0 %443 }
  0xb1   : > { %487 = vst.msk [vmem:[%s1951_s4 + $0x51] sm:$0xff] %vm479_vm3, %v446_v37  ;;  %486 = vst.msk [vmem:[%s1951_s4 + $0x49] sm:$0xff] %vm479_vm3, %v444_v38 }
  0xb2   : > { %869 = vrot.lane.b32.xlu1 %v2306_v27, %s1788_s9  ;;  %867 = vrot.lane.b32.xlu0 %v2309_v36, %s1788_s9 }
  0xb4   : > { %v450_v41 = vpop.permute.xlu1 %449  ;;  %v448_v42 = vpop.permute.xlu0 %447 }
  0xb5   : > { %489 = vst.msk [vmem:[%s1951_s4 + $0x69] sm:$0xff] %vm479_vm3, %v450_v41  ;;  %488 = vst.msk [vmem:[%s1951_s4 + $0x61] sm:$0xff] %vm479_vm3, %v448_v42 }
  0xb6   : > { %873 = vrot.lane.b32.xlu1 %v2320_v39, %s1788_s9  ;;  %871 = vrot.lane.b32.xlu0 %v2323_v40, %s1788_s9 }
  0xb8   : > { %v454_v49 = vpop.permute.xlu1 %453  ;;  %v452_v51 = vpop.permute.xlu0 %451 }
  0xb9   : > { %491 = vst.msk [vmem:[%s1951_s4 + $0x81] sm:$0xff] %vm479_vm3, %v454_v49  ;;  %490 = vst.msk [vmem:[%s1951_s4 + $0x79] sm:$0xff] %vm479_vm3, %v452_v51 }
  0xba   : > { %877 = vrot.lane.b32.xlu1 %v2334_v43, %s1788_s9  ;;  %875 = vrot.lane.b32.xlu0 %v2337_v48, %s1788_s9 }
  0xbc   : > { %v458_v54 = vpop.permute.xlu1 %457  ;;  %v456_v57 = vpop.permute.xlu0 %455 }
  0xbd   : > { %493 = vst.msk [vmem:[%s1951_s4 + $0x99] sm:$0xff] %vm479_vm3, %v458_v54  ;;  %492 = vst.msk [vmem:[%s1951_s4 + $0x91] sm:$0xff] %vm479_vm3, %v456_v57 }
  0xbe   : > { %881 = vrot.lane.b32.xlu1 %v2348_v52, %s1788_s9  ;;  %879 = vrot.lane.b32.xlu0 %v2351_v53, %s1788_s9 }
  0xc0   : > { %v462_v62 = vpop.permute.xlu1 %461  ;;  %v460_v1 = vpop.permute.xlu0 %459 }
  0xc1   : > { %495 = vst.msk [vmem:[%s1951_s4 + $0xb1] sm:$0xff] %vm479_vm3, %v462_v62  ;;  %494 = vst.msk [vmem:[%s1951_s4 + $0xa9] sm:$0xff] %vm479_vm3, %v460_v1 }
  0xc2   : > { %949 = vrot.lane.b32.xlu1 %v2362_v58, %s1788_s9  ;;  %947 = vrot.lane.b32.xlu0 %v2365_v61, %s1788_s9 }
  0xc4   : > { %v564_v6 = vpop.permute.xlu1 %563  ;;  %v562_v9 = vpop.permute.xlu0 %561 }
  0xc5   : > { %1519 = vst.msk [vmem:[%s1951_s4 + $0xc9] sm:$0xff] %vm364_vm1, %v564_v6  ;;  %1518 = vst.msk [vmem:[%s1951_s4 + $0xc1] sm:$0xff] %vm364_vm1, %v562_v9 }
  0xc6   : > { %953 = vrot.lane.b32.xlu1 %v2376_v2, %s1788_s9  ;;  %951 = vrot.lane.b32.xlu0 %v2379_v5, %s1788_s9 }
  0xc8   : > { %v568_v14 = vpop.permute.xlu1 %567  ;;  %v566_v21 = vpop.permute.xlu0 %565 }
  0xc9   : > { %1521 = vst.msk [vmem:[%s1951_s4 + $0xe1] sm:$0xff] %vm364_vm1, %v568_v14  ;;  %1520 = vst.msk [vmem:[%s1951_s4 + $0xd9] sm:$0xff] %vm364_vm1, %v566_v21 }
  0xca   : > { %957 = vrot.lane.b32.xlu1 %v2390_v10, %s1788_s9  ;;  %955 = vrot.lane.b32.xlu0 %v2393_v13, %s1788_s9 }
  0xcc   : > { %v572_v26 = vpop.permute.xlu1 %571  ;;  %v570_v37 = vpop.permute.xlu0 %569 }
  0xcd   : > { %1523 = vst.msk [vmem:[%s1951_s4 + $0xf9] sm:$0xff] %vm364_vm1, %v572_v26  ;;  %1522 = vst.msk [vmem:[%s1951_s4 + $0xf1] sm:$0xff] %vm364_vm1, %v570_v37 }
  0xce   : > { %961 = vrot.lane.b32.xlu1 %v2404_v22, %s1788_s9  ;;  %959 = vrot.lane.b32.xlu0 %v2407_v25, %s1788_s9 }
  0xd0   : > { %v576_v38 = vpop.permute.xlu1 %575  ;;  %v574_v41 = vpop.permute.xlu0 %573 }
  0xd1   : > { %1525 = vst.msk [vmem:[%s1951_s4 + $0x111] sm:$0xff] %vm364_vm1, %v576_v38  ;;  %1524 = vst.msk [vmem:[%s1951_s4 + $0x109] sm:$0xff] %vm364_vm1, %v574_v41 }
  0xd2   : > { %1013 = vrot.lane.b32.xlu1 %v2164_v55, %s1784_s21  ;;  %1011 = vrot.lane.b32.xlu0 %v2167_v56, %s1784_s21 }
  0xd4   : > { %v580_v42 = vpop.permute.xlu1 %579  ;;  %v578_v49 = vpop.permute.xlu0 %577 }
  0xd5   : > { %1527 = vst.msk [vmem:[%s1951_s4 + $0x129] sm:$0xff] %vm364_vm1, %v580_v42  ;;  %1526 = vst.msk [vmem:[%s1951_s4 + $0x121] sm:$0xff] %vm364_vm1, %v578_v49 }
  0xd6   : > { %1017 = vrot.lane.b32.xlu1 %v2184_v59, %s1784_s21  ;;  %1015 = vrot.lane.b32.xlu0 %v2187_v60, %s1784_s21 }
  0xd8   : > { %v584_v55 = vpop.permute.xlu1 %583  ;;  %v582_v51 = vpop.permute.xlu0 %581 }
  0xd9   : > { %1529 = vst.msk [vmem:[%s1951_s4 + $0x141] sm:$0xff] %vm364_vm1, %v584_v55  ;;  %1528 = vst.msk [vmem:[%s1951_s4 + $0x139] sm:$0xff] %vm364_vm1, %v582_v51 }
  0xda   : > { %1021 = vrot.lane.b32.xlu1 %v2204_v63, %s1784_s21  ;;  %1019 = vrot.lane.b32.xlu0 %v2207_v0, %s1784_s21 }
  0xdc   : > { %v588_v56 = vpop.permute.xlu1 %587  ;;  %v586_v59 = vpop.permute.xlu0 %585 }
  0xdd   : > { %1531 = vst.msk [vmem:[%s1951_s4 + $0x159] sm:$0xff] %vm364_vm1, %v588_v56  ;;  %1530 = vst.msk [vmem:[%s1951_s4 + $0x151] sm:$0xff] %vm364_vm1, %v586_v59 }
  0xde   : > { %1025 = vrot.lane.b32.xlu1 %v2224_v3, %s1784_s21  ;;  %1023 = vrot.lane.b32.xlu0 %v2227_v4, %s1784_s21 }
  0xe0   : > { %v592_v60 = vpop.permute.xlu1 %591  ;;  %v590_v63 = vpop.permute.xlu0 %589 }
  0xe1   : > { %1533 = vst.msk [vmem:[%s1951_s4 + $0x171] sm:$0xff] %vm364_vm1, %v592_v60  ;;  %1532 = vst.msk [vmem:[%s1951_s4 + $0x169] sm:$0xff] %vm364_vm1, %v590_v63 }
  0xe2   : > { %1029 = vrot.lane.b32.xlu1 %v2244_v7, %s1784_s21  ;;  %1027 = vrot.lane.b32.xlu0 %v2247_v8, %s1784_s21 }
  0xe4   : > { %v661_v0 = vpop.permute.xlu1 %660  ;;  %v659_v3 = vpop.permute.xlu0 %658 }
  0xe5   : > { %1535 = vst.msk [vmem:[%s1951_s4 + $0xc9] sm:$0xff] %vm381_vm2, %v661_v0  ;;  %1534 = vst.msk [vmem:[%s1951_s4 + $0xc1] sm:$0xff] %vm381_vm2, %v659_v3 }
  0xe6   : > { %1033 = vrot.lane.b32.xlu1 %v2264_v11, %s1784_s21  ;;  %1031 = vrot.lane.b32.xlu0 %v2267_v12, %s1784_s21 }
  0xe8   : > { %v665_v4 = vpop.permute.xlu1 %664  ;;  %v663_v7 = vpop.permute.xlu0 %662 }
  0xe9   : > { %1537 = vst.msk [vmem:[%s1951_s4 + $0xe1] sm:$0xff] %vm381_vm2, %v665_v4  ;;  %1536 = vst.msk [vmem:[%s1951_s4 + $0xd9] sm:$0xff] %vm381_vm2, %v663_v7 }
  0xea   : > { %1037 = vrot.lane.b32.xlu1 %v2278_v15, %s1784_s21  ;;  %1035 = vrot.lane.b32.xlu0 %v2281_v20, %s1784_s21 }
  0xec   : > { %v669_v8 = vpop.permute.xlu1 %668  ;;  %v667_v11 = vpop.permute.xlu0 %666 }
  0xed   : > { %1539 = vst.msk [vmem:[%s1951_s4 + $0xf9] sm:$0xff] %vm381_vm2, %v669_v8  ;;  %1538 = vst.msk [vmem:[%s1951_s4 + $0xf1] sm:$0xff] %vm381_vm2, %v667_v11 }
  0xee   : > { %1041 = vrot.lane.b32.xlu1 %v2292_v23, %s1784_s21  ;;  %1039 = vrot.lane.b32.xlu0 %v2295_v24, %s1784_s21 }
  0xf0   : > { %v673_v12 = vpop.permute.xlu1 %672  ;;  %v671_v15 = vpop.permute.xlu0 %670 }
  0xf1   : > { %1541 = vst.msk [vmem:[%s1951_s4 + $0x111] sm:$0xff] %vm381_vm2, %v673_v12  ;;  %1540 = vst.msk [vmem:[%s1951_s4 + $0x109] sm:$0xff] %vm381_vm2, %v671_v15 }
  0xf2   : > { %1110 = vrot.lane.b32.xlu1 %v1922_v16, %s1786_s8  ;;  %1108 = vrot.lane.b32.xlu0 %v1925_v17, %s1786_s8 }
  0xf4   : > { %v677_v20 = vpop.permute.xlu1 %676  ;;  %v675_v23 = vpop.permute.xlu0 %674 }
  0xf5   : > { %1543 = vst.msk [vmem:[%s1951_s4 + $0x129] sm:$0xff] %vm381_vm2, %v677_v20  ;;  %1542 = vst.msk [vmem:[%s1951_s4 + $0x121] sm:$0xff] %vm381_vm2, %v675_v23 }
  0xf6   : > { %1114 = vrot.lane.b32.xlu1 %v1936_v18, %s1786_s8  ;;  %1112 = vrot.lane.b32.xlu0 %v1939_v19, %s1786_s8 }
  0xf8   : > { %v681_v16 = vpop.permute.xlu1 %680  ;;  %v679_v24 = vpop.permute.xlu0 %678 }
  0xf9   : > { %1545 = vst.msk [vmem:[%s1951_s4 + $0x141] sm:$0xff] %vm381_vm2, %v681_v16  ;;  %1544 = vst.msk [vmem:[%s1951_s4 + $0x139] sm:$0xff] %vm381_vm2, %v679_v24 }
  0xfa   : > { %1118 = vrot.lane.b32.xlu1 %v1979_v28, %s1786_s8  ;;  %1116 = vrot.lane.b32.xlu0 %v1982_v29, %s1786_s8 }
  0xfc   : > { %v685_v17 = vpop.permute.xlu1 %684  ;;  %v683_v18 = vpop.permute.xlu0 %682 }
  0xfd   : > { %1547 = vst.msk [vmem:[%s1951_s4 + $0x159] sm:$0xff] %vm381_vm2, %v685_v17  ;;  %1546 = vst.msk [vmem:[%s1951_s4 + $0x151] sm:$0xff] %vm381_vm2, %v683_v18 }
  0xfe   : > { %1122 = vrot.lane.b32.xlu1 %v1989_v30, %s1786_s8  ;;  %1120 = vrot.lane.b32.xlu0 %v1992_v31, %s1786_s8 }
 0x100   : > { %v689_v19 = vpop.permute.xlu1 %688  ;;  %v687_v28 = vpop.permute.xlu0 %686 }
 0x101   : > { %1549 = vst.msk [vmem:[%s1951_s4 + $0x171] sm:$0xff] %vm381_vm2, %v689_v19  ;;  %1548 = vst.msk [vmem:[%s1951_s4 + $0x169] sm:$0xff] %vm381_vm2, %v687_v28 }
 0x102   : > { %1126 = vrot.lane.b32.xlu1 %v1999_v32, %s1786_s8  ;;  %1124 = vrot.lane.b32.xlu0 %v2002_v33, %s1786_s8 }
 0x104   : > { %v758_v29 = vpop.permute.xlu1 %757  ;;  %v756_v30 = vpop.permute.xlu0 %755 }
 0x105   : > { %1567 = vst.msk [vmem:[%s1951_s4 + $0xc9] sm:$0xff] %vm479_vm3, %v758_v29  ;;  %1566 = vst.msk [vmem:[%s1951_s4 + $0xc1] sm:$0xff] %vm479_vm3, %v756_v30 }
 0x106   : > { %1130 = vrot.lane.b32.xlu1 %v2012_v34, %s1786_s8  ;;  %1128 = vrot.lane.b32.xlu0 %v2015_v35, %s1786_s8 }
 0x108   : > { %v762_v31 = vpop.permute.xlu1 %761  ;;  %v760_v32 = vpop.permute.xlu0 %759 }
 0x109   : > { %1569 = vst.msk [vmem:[%s1951_s4 + $0xe1] sm:$0xff] %vm479_vm3, %v762_v31  ;;  %1568 = vst.msk [vmem:[%s1951_s4 + $0xd9] sm:$0xff] %vm479_vm3, %v760_v32 }
 0x10a   : > { %1134 = vrot.lane.b32.xlu1 %v2050_v44, %s1786_s8  ;;  %1132 = vrot.lane.b32.xlu0 %v2053_v45, %s1786_s8 }
 0x10c   : > { %v766_v33 = vpop.permute.xlu1 %765  ;;  %v764_v34 = vpop.permute.xlu0 %763 }
 0x10d   : > { %1571 = vst.msk [vmem:[%s1951_s4 + $0xf9] sm:$0xff] %vm479_vm3, %v766_v33  ;;  %1570 = vst.msk [vmem:[%s1951_s4 + $0xf1] sm:$0xff] %vm479_vm3, %v764_v34 }
 0x10e   : > { %1138 = vrot.lane.b32.xlu1 %v2060_v46, %s1786_s8  ;;  %1136 = vrot.lane.b32.xlu0 %v2063_v47, %s1786_s8 }
 0x110   : > { %v770_v35 = vpop.permute.xlu1 %769  ;;  %v768_v44 = vpop.permute.xlu0 %767 }
 0x111   : > { %1573 = vst.msk [vmem:[%s1951_s4 + $0x111] sm:$0xff] %vm479_vm3, %v770_v35  ;;  %1572 = vst.msk [vmem:[%s1951_s4 + $0x109] sm:$0xff] %vm479_vm3, %v768_v44 }
 0x112   : > { %1238 = vrot.lane.b32.xlu1 %v2306_v27, %s1789_s10  ;;  %1236 = vrot.lane.b32.xlu0 %v2309_v36, %s1789_s10 }
 0x114   : > { %v774_v45 = vpop.permute.xlu1 %773  ;;  %v772_v46 = vpop.permute.xlu0 %771 }
 0x115   : > { %1575 = vst.msk [vmem:[%s1951_s4 + $0x129] sm:$0xff] %vm479_vm3, %v774_v45  ;;  %1574 = vst.msk [vmem:[%s1951_s4 + $0x121] sm:$0xff] %vm479_vm3, %v772_v46 }
 0x116   : > { %1242 = vrot.lane.b32.xlu1 %v2320_v39, %s1789_s10  ;;  %1240 = vrot.lane.b32.xlu0 %v2323_v40, %s1789_s10 }
 0x118   : > { %v778_v47 = vpop.permute.xlu1 %777  ;;  %v776_v27 = vpop.permute.xlu0 %775 }
 0x119   : > { %1577 = vst.msk [vmem:[%s1951_s4 + $0x141] sm:$0xff] %vm479_vm3, %v778_v47  ;;  %1576 = vst.msk [vmem:[%s1951_s4 + $0x139] sm:$0xff] %vm479_vm3, %v776_v27 }
 0x11a   : > { %1246 = vrot.lane.b32.xlu1 %v2334_v43, %s1789_s10  ;;  %1244 = vrot.lane.b32.xlu0 %v2337_v48, %s1789_s10 }
 0x11c   : > { %v782_v36 = vpop.permute.xlu1 %781  ;;  %v780_v39 = vpop.permute.xlu0 %779 }
 0x11d   : > { %1579 = vst.msk [vmem:[%s1951_s4 + $0x159] sm:$0xff] %vm479_vm3, %v782_v36  ;;  %1578 = vst.msk [vmem:[%s1951_s4 + $0x151] sm:$0xff] %vm479_vm3, %v780_v39 }
 0x11e   : > { %1250 = vrot.lane.b32.xlu1 %v2348_v52, %s1789_s10  ;;  %1248 = vrot.lane.b32.xlu0 %v2351_v53, %s1789_s10 }
 0x120   : > { %v786_v40 = vpop.permute.xlu1 %785  ;;  %v784_v43 = vpop.permute.xlu0 %783 }
 0x121   : > { %1581 = vst.msk [vmem:[%s1951_s4 + $0x171] sm:$0xff] %vm479_vm3, %v786_v40  ;;  %1580 = vst.msk [vmem:[%s1951_s4 + $0x169] sm:$0xff] %vm479_vm3, %v784_v43 }
 0x122   : > { %1318 = vrot.lane.b32.xlu1 %v2362_v58, %s1789_s10  ;;  %1316 = vrot.lane.b32.xlu0 %v2365_v61, %s1789_s10 }
 0x124   : > { %v870_v48 = vpop.permute.xlu1 %869  ;;  %v868_v52 = vpop.permute.xlu0 %867 }
 0x125   : > { %1591 = vst.msk [vmem:[%s1951_s4 + $0xd8] sm:$0x1] %vm504_vm0, %v870_v48  ;;  %1590 = vst.msk [vmem:[%s1951_s4 + $0xc0] sm:$0x1] %vm504_vm0, %v868_v52 }
 0x126   : > { %1322 = vrot.lane.b32.xlu1 %v2376_v2, %s1789_s10  ;;  %1320 = vrot.lane.b32.xlu0 %v2379_v5, %s1789_s10 }
 0x128   : > { %v874_v53 = vpop.permute.xlu1 %873  ;;  %v872_v54 = vpop.permute.xlu0 %871 }
 0x129   : > { %1593 = vst.msk [vmem:[%s1951_s4 + $0x108] sm:$0x1] %vm504_vm0, %v874_v53  ;;  %1592 = vst.msk [vmem:[%s1951_s4 + $0xf0] sm:$0x1] %vm504_vm0, %v872_v54 }
 0x12a   : > { %1326 = vrot.lane.b32.xlu1 %v2390_v10, %s1789_s10  ;;  %1324 = vrot.lane.b32.xlu0 %v2393_v13, %s1789_s10 }
 0x12c   : > { %v878_v57 = vpop.permute.xlu1 %877  ;;  %v876_v58 = vpop.permute.xlu0 %875 }
 0x12d   : > { %1595 = vst.msk [vmem:[%s1951_s4 + $0x138] sm:$0x1] %vm504_vm0, %v878_v57  ;;  %1594 = vst.msk [vmem:[%s1951_s4 + $0x120] sm:$0x1] %vm504_vm0, %v876_v58 }
 0x12e   : > { %1330 = vrot.lane.b32.xlu1 %v2404_v22, %s1789_s10  ;;  %1328 = vrot.lane.b32.xlu0 %v2407_v25, %s1789_s10 }
 0x130   : > { %v882_v61 = vpop.permute.xlu1 %881  ;;  %v880_v62 = vpop.permute.xlu0 %879 }
 0x131   : > { %1597 = vst.msk [vmem:[%s1951_s4 + $0x168] sm:$0x1] %vm504_vm0, %v882_v61  ;;  %1596 = vst.msk [vmem:[%s1951_s4 + $0x150] sm:$0x1] %vm504_vm0, %v880_v62 }
 0x134   : > { %v950_v1 = vpop.permute.xlu1 %949  ;;  %v948_v2 = vpop.permute.xlu0 %947 }
 0x135   : > { %1607 = vst.msk [vmem:[%s1951_s4 + $0xe9] sm:$0x1] %vm504_vm0, %v950_v1  ;;  %1606 = vst.msk [vmem:[%s1951_s4 + $0xd1] sm:$0x1] %vm504_vm0, %v948_v2 }
 0x138   : > { %v954_v5 = vpop.permute.xlu1 %953  ;;  %v952_v6 = vpop.permute.xlu0 %951 }
 0x139   : > { %1609 = vst.msk [vmem:[%s1951_s4 + $0x119] sm:$0x1] %vm504_vm0, %v954_v5  ;;  %1608 = vst.msk [vmem:[%s1951_s4 + $0x101] sm:$0x1] %vm504_vm0, %v952_v6 }
 0x13c   : > { %v958_v9 = vpop.permute.xlu1 %957  ;;  %v956_v10 = vpop.permute.xlu0 %955 }
 0x13d   : > { %1611 = vst.msk [vmem:[%s1951_s4 + $0x149] sm:$0x1] %vm504_vm0, %v958_v9  ;;  %1610 = vst.msk [vmem:[%s1951_s4 + $0x131] sm:$0x1] %vm504_vm0, %v956_v10 }
 0x140   : > { %v962_v13 = vpop.permute.xlu1 %961  ;;  %v960_v14 = vpop.permute.xlu0 %959 }
 0x141   : > { %1613 = vst.msk [vmem:[%s1951_s4 + $0x179] sm:$0x1] %vm504_vm0, %v962_v13  ;;  %1612 = vst.msk [vmem:[%s1951_s4 + $0x161] sm:$0x1] %vm504_vm0, %v960_v14 }
 0x144   : > { %v1014_v21 = vpop.permute.xlu1 %1013  ;;  %v1012_v22 = vpop.permute.xlu0 %1011 }
 0x145   : > { %1631 = vst.msk [vmem:[%s1951_s4 + $0x189] sm:$0xff] %vm364_vm1, %v1014_v21  ;;  %1630 = vst.msk [vmem:[%s1951_s4 + $0x181] sm:$0xff] %vm364_vm1, %v1012_v22 }
 0x148   : > { %v1018_v25 = vpop.permute.xlu1 %1017  ;;  %v1016_v26 = vpop.permute.xlu0 %1015 }
 0x149   : > { %1633 = vst.msk [vmem:[%s1951_s4 + $0x1a1] sm:$0xff] %vm364_vm1, %v1018_v25  ;;  %1632 = vst.msk [vmem:[%s1951_s4 + $0x199] sm:$0xff] %vm364_vm1, %v1016_v26 }
 0x14c   : > { %v1022_v37 = vpop.permute.xlu1 %1021  ;;  %v1020_v38 = vpop.permute.xlu0 %1019 }
 0x14d   : > { %1635 = vst.msk [vmem:[%s1951_s4 + $0x1b9] sm:$0xff] %vm364_vm1, %v1022_v37  ;;  %1634 = vst.msk [vmem:[%s1951_s4 + $0x1b1] sm:$0xff] %vm364_vm1, %v1020_v38 }
 0x150   : > { %v1026_v41 = vpop.permute.xlu1 %1025  ;;  %v1024_v42 = vpop.permute.xlu0 %1023 }
 0x151   : > { %1637 = vst.msk [vmem:[%s1951_s4 + $0x1d1] sm:$0xff] %vm364_vm1, %v1026_v41  ;;  %1636 = vst.msk [vmem:[%s1951_s4 + $0x1c9] sm:$0xff] %vm364_vm1, %v1024_v42 }
 0x154   : > { %v1030_v49 = vpop.permute.xlu1 %1029  ;;  %v1028_v55 = vpop.permute.xlu0 %1027 }
 0x155   : > { %1639 = vst.msk [vmem:[%s1951_s4 + $0x1e9] sm:$0xff] %vm364_vm1, %v1030_v49  ;;  %1638 = vst.msk [vmem:[%s1951_s4 + $0x1e1] sm:$0xff] %vm364_vm1, %v1028_v55 }
 0x158   : > { %v1034_v51 = vpop.permute.xlu1 %1033  ;;  %v1032_v56 = vpop.permute.xlu0 %1031 }
 0x159   : > { %1641 = vst.msk [vmem:[%s1951_s4 + $0x201] sm:$0xff] %vm364_vm1, %v1034_v51  ;;  %1640 = vst.msk [vmem:[%s1951_s4 + $0x1f9] sm:$0xff] %vm364_vm1, %v1032_v56 }
 0x15c   : > { %v1038_v59 = vpop.permute.xlu1 %1037  ;;  %v1036_v60 = vpop.permute.xlu0 %1035 }
 0x15d   : > { %1643 = vst.msk [vmem:[%s1951_s4 + $0x219] sm:$0xff] %vm364_vm1, %v1038_v59  ;;  %1642 = vst.msk [vmem:[%s1951_s4 + $0x211] sm:$0xff] %vm364_vm1, %v1036_v60 }
 0x160   : > { %v1042_v63 = vpop.permute.xlu1 %1041  ;;  %v1040_v0 = vpop.permute.xlu0 %1039 }
 0x161   : > { %1645 = vst.msk [vmem:[%s1951_s4 + $0x231] sm:$0xff] %vm364_vm1, %v1042_v63  ;;  %1644 = vst.msk [vmem:[%s1951_s4 + $0x229] sm:$0xff] %vm364_vm1, %v1040_v0 }
 0x164   : > { %v1111_v3 = vpop.permute.xlu1 %1110  ;;  %v1109_v4 = vpop.permute.xlu0 %1108 }
 0x165   : > { %1663 = vst.msk [vmem:[%s1951_s4 + $0x189] sm:$0xff] %vm381_vm2, %v1111_v3  ;;  %1662 = vst.msk [vmem:[%s1951_s4 + $0x181] sm:$0xff] %vm381_vm2, %v1109_v4 }
 0x166   : > { %1679 = vst.msk [vmem:[%s1951_s4 + $0x189] sm:$0xff] %vm479_vm3, %v1787_v50  ;;  %1678 = vst.msk [vmem:[%s1951_s4 + $0x181] sm:$0xff] %vm479_vm3, %v1787_v50 }
 0x168   : > { %v1115_v7 = vpop.permute.xlu1 %1114  ;;  %v1113_v8 = vpop.permute.xlu0 %1112 }
 0x169   : > { %1665 = vst.msk [vmem:[%s1951_s4 + $0x1a1] sm:$0xff] %vm381_vm2, %v1115_v7  ;;  %1664 = vst.msk [vmem:[%s1951_s4 + $0x199] sm:$0xff] %vm381_vm2, %v1113_v8 }
 0x16a   : > { %1681 = vst.msk [vmem:[%s1951_s4 + $0x1a1] sm:$0xff] %vm479_vm3, %v1787_v50  ;;  %1680 = vst.msk [vmem:[%s1951_s4 + $0x199] sm:$0xff] %vm479_vm3, %v1787_v50 }
 0x16c   : > { %v1119_v11 = vpop.permute.xlu1 %1118  ;;  %v1117_v12 = vpop.permute.xlu0 %1116 }
 0x16d   : > { %1667 = vst.msk [vmem:[%s1951_s4 + $0x1b9] sm:$0xff] %vm381_vm2, %v1119_v11  ;;  %1666 = vst.msk [vmem:[%s1951_s4 + $0x1b1] sm:$0xff] %vm381_vm2, %v1117_v12 }
 0x16e   : > { %1683 = vst.msk [vmem:[%s1951_s4 + $0x1b9] sm:$0xff] %vm479_vm3, %v1787_v50  ;;  %1682 = vst.msk [vmem:[%s1951_s4 + $0x1b1] sm:$0xff] %vm479_vm3, %v1787_v50 }
 0x170   : > { %v1123_v15 = vpop.permute.xlu1 %1122  ;;  %v1121_v20 = vpop.permute.xlu0 %1120 }
 0x171   : > { %1669 = vst.msk [vmem:[%s1951_s4 + $0x1d1] sm:$0xff] %vm381_vm2, %v1123_v15  ;;  %1668 = vst.msk [vmem:[%s1951_s4 + $0x1c9] sm:$0xff] %vm381_vm2, %v1121_v20 }
 0x172   : > { %1685 = vst.msk [vmem:[%s1951_s4 + $0x1d1] sm:$0xff] %vm479_vm3, %v1787_v50  ;;  %1684 = vst.msk [vmem:[%s1951_s4 + $0x1c9] sm:$0xff] %vm479_vm3, %v1787_v50 }
 0x174   : > { %v1127_v23 = vpop.permute.xlu1 %1126  ;;  %v1125_v16 = vpop.permute.xlu0 %1124 }
 0x175   : > { %1671 = vst.msk [vmem:[%s1951_s4 + $0x1e9] sm:$0xff] %vm381_vm2, %v1127_v23  ;;  %1670 = vst.msk [vmem:[%s1951_s4 + $0x1e1] sm:$0xff] %vm381_vm2, %v1125_v16 }
 0x176   : > { %1687 = vst.msk [vmem:[%s1951_s4 + $0x1e9] sm:$0xff] %vm479_vm3, %v1787_v50  ;;  %1686 = vst.msk [vmem:[%s1951_s4 + $0x1e1] sm:$0xff] %vm479_vm3, %v1787_v50 }
 0x178   : > { %v1131_v24 = vpop.permute.xlu1 %1130  ;;  %v1129_v17 = vpop.permute.xlu0 %1128 }
 0x179   : > { %1673 = vst.msk [vmem:[%s1951_s4 + $0x201] sm:$0xff] %vm381_vm2, %v1131_v24  ;;  %1672 = vst.msk [vmem:[%s1951_s4 + $0x1f9] sm:$0xff] %vm381_vm2, %v1129_v17 }
 0x17a   : > { %1689 = vst.msk [vmem:[%s1951_s4 + $0x201] sm:$0xff] %vm479_vm3, %v1787_v50  ;;  %1688 = vst.msk [vmem:[%s1951_s4 + $0x1f9] sm:$0xff] %vm479_vm3, %v1787_v50 }
 0x17c   : > { %v1135_v18 = vpop.permute.xlu1 %1134  ;;  %v1133_v19 = vpop.permute.xlu0 %1132 }
 0x17d   : > { %1675 = vst.msk [vmem:[%s1951_s4 + $0x219] sm:$0xff] %vm381_vm2, %v1135_v18  ;;  %1674 = vst.msk [vmem:[%s1951_s4 + $0x211] sm:$0xff] %vm381_vm2, %v1133_v19 }
 0x17e   : > { %1691 = vst.msk [vmem:[%s1951_s4 + $0x219] sm:$0xff] %vm479_vm3, %v1787_v50  ;;  %1690 = vst.msk [vmem:[%s1951_s4 + $0x211] sm:$0xff] %vm479_vm3, %v1787_v50 }
 0x180   : > { %v1139_v28 = vpop.permute.xlu1 %1138  ;;  %v1137_v29 = vpop.permute.xlu0 %1136 }
 0x181   : > { %1677 = vst.msk [vmem:[%s1951_s4 + $0x231] sm:$0xff] %vm381_vm2, %v1139_v28  ;;  %1676 = vst.msk [vmem:[%s1951_s4 + $0x229] sm:$0xff] %vm381_vm2, %v1137_v29 }
 0x182   : > { %1693 = vst.msk [vmem:[%s1951_s4 + $0x231] sm:$0xff] %vm479_vm3, %v1787_v50  ;;  %1692 = vst.msk [vmem:[%s1951_s4 + $0x229] sm:$0xff] %vm479_vm3, %v1787_v50 }
 0x184   : > { %v1239_v30 = vpop.permute.xlu1 %1238  ;;  %v1237_v31 = vpop.permute.xlu0 %1236 }
 0x185   : > { %1703 = vst.msk [vmem:[%s1951_s4 + $0x198] sm:$0x1] %vm504_vm0, %v1239_v30  ;;  %1702 = vst.msk [vmem:[%s1951_s4 + $0x180] sm:$0x1] %vm504_vm0, %v1237_v31 }
 0x188   : > { %v1243_v32 = vpop.permute.xlu1 %1242  ;;  %v1241_v33 = vpop.permute.xlu0 %1240 }
 0x189   : > { %1705 = vst.msk [vmem:[%s1951_s4 + $0x1c8] sm:$0x1] %vm504_vm0, %v1243_v32  ;;  %1704 = vst.msk [vmem:[%s1951_s4 + $0x1b0] sm:$0x1] %vm504_vm0, %v1241_v33 }
 0x18c   : > { %v1247_v34 = vpop.permute.xlu1 %1246  ;;  %v1245_v35 = vpop.permute.xlu0 %1244 }
 0x18d   : > { %1707 = vst.msk [vmem:[%s1951_s4 + $0x1f8] sm:$0x1] %vm504_vm0, %v1247_v34  ;;  %1706 = vst.msk [vmem:[%s1951_s4 + $0x1e0] sm:$0x1] %vm504_vm0, %v1245_v35 }
 0x190   : > { %v1251_v50 = vpop.permute.xlu1 %1250  ;;  %v1249_v44 = vpop.permute.xlu0 %1248 }
 0x191   : > { %1709 = vst.msk [vmem:[%s1951_s4 + $0x228] sm:$0x1] %vm504_vm0, %v1251_v50  ;;  %1708 = vst.msk [vmem:[%s1951_s4 + $0x210] sm:$0x1] %vm504_vm0, %v1249_v44 }
 0x194   : > { %v1319_v45 = vpop.permute.xlu1 %1318  ;;  %v1317_v46 = vpop.permute.xlu0 %1316 }
 0x195   : > { %1719 = vst.msk [vmem:[%s1951_s4 + $0x1a9] sm:$0x1] %vm504_vm0, %v1319_v45  ;;  %1718 = vst.msk [vmem:[%s1951_s4 + $0x191] sm:$0x1] %vm504_vm0, %v1317_v46 }
 0x198   : > { %v1323_v47 = vpop.permute.xlu1 %1322  ;;  %v1321_v27 = vpop.permute.xlu0 %1320 }
 0x199   : > { %1721 = vst.msk [vmem:[%s1951_s4 + $0x1d9] sm:$0x1] %vm504_vm0, %v1323_v47  ;;  %1720 = vst.msk [vmem:[%s1951_s4 + $0x1c1] sm:$0x1] %vm504_vm0, %v1321_v27 }
 0x19c   : > { %v1327_v36 = vpop.permute.xlu1 %1326  ;;  %v1325_v39 = vpop.permute.xlu0 %1324 }
 0x19d   : > { %1723 = vst.msk [vmem:[%s1951_s4 + $0x209] sm:$0x1] %vm504_vm0, %v1327_v36  ;;  %1722 = vst.msk [vmem:[%s1951_s4 + $0x1f1] sm:$0x1] %vm504_vm0, %v1325_v39 }
 0x1a0   : > { %v1331_v40 = vpop.permute.xlu1 %1330  ;;  %v1329_v43 = vpop.permute.xlu0 %1328 }
 0x1a1   : > { %1725 = vst.msk [vmem:[%s1951_s4 + $0x239] sm:$0x1] %vm504_vm0, %v1331_v40  ;;  %1724 = vst.msk [vmem:[%s1951_s4 + $0x221] sm:$0x1] %vm504_vm0, %v1329_v43 }
 0x1a2 PF: > { %s13_s14 = sadd.s32 1, %s1782_s14   ;;  %s2786_s12 = smov %s1778_s13 }
 0x1a3   : > { %p10_p6 = scmp.ge.s32.totalorder %s13_s14, 5   ;;  %s2787_s13 = smov %s2789_s15 }
 0x1a5   :  { %12 = sbr.rel (!%p10_p6) target bundleno = 2 (0x2), region = 72 }

</bundles_post_ra>
